<compile_context>
chip_gen: v6e
topology: v6e:2x2x1
jax: 0.10.0
libtpu: 0.0.40
codegen_flags: <defaults>
</compile_context>

<pallas_src>
import functools

import jax
import jax.numpy as jnp
from jax.experimental import pallas as pl
from jax.experimental.pallas import tpu as pltpu


def _round_up(v, m):
    return ((v + m - 1) // m) * m


def _amnre_block_kernel(featT_ref, w1t_ref, w2_ref, b2_ref, out_ref, *, d, tm, n):
    """One block: TM samples (on lanes) x both streams -> (1,128) partial nll sums."""
    f32 = jnp.float32

    ft = featT_ref[...]                  # (3D+L, TM): feature-major, samples on lanes
    th = ft[:d, :]                       # theta
    thp = ft[d:2 * d, :]                 # theta rolled by 1 (globally, in the wrapper)
    bm = ft[2 * d:3 * d, :]              # Bernoulli mask b
    bx = ft[2 * d:, :]                   # [b ; x] rows — already contiguous

    # Mask multiply in f32 (v5e VPU/EUP have no bf16); exact on cast-back (b in {0,1}).
    tb = (th.astype(f32) * bm.astype(f32)).astype(ft.dtype)
    tbp = (thp.astype(f32) * bm.astype(f32)).astype(ft.dtype)
    ones = jnp.ones((1, tm), dtype=ft.dtype)     # bias column (b1 fused into W1^T)

    w1t = w1t_ref[...]                   # (H, F+1), last column is b1
    w2r = w2_ref[...]                    # (1, H), f32
    b2 = b2_ref[0, 0]                    # scalar straight from SMEM

    def stream_nll(masked_theta, sign):
        # Full-width fused layer 1: one (H, F+1) @ (F+1, TM) MXU dot per stream.
        feats = jnp.concatenate([masked_theta, bx, ones], axis=0)        # (F+1, TM)
        h = jnp.dot(w1t, feats, preferred_element_type=f32)              # (H, TM) f32
        h = jnp.maximum(h, 0.0)
        # Lane-dense layer 2: (1,H) @ (H,TM) -> (1,TM); EUP sees full 128-lane vregs.
        z = jnp.dot(w2r, h, preferred_element_type=f32) + b2             # (1, TM)
        t = sign * z
        # numerically stable -logsigmoid(t)
        return jnp.log1p(jnp.exp(-jnp.abs(t))) - jnp.minimum(t, 0.0)

    nll = stream_nll(tb, 1.0) + stream_nll(tbp, -1.0)                    # (1, TM)

    if n % tm:  # static: only needed when the sample dim was padded
        lane = jax.lax.broadcasted_iota(jnp.int32, (1, tm), 1)
        nll = jnp.where(pl.program_id(0) * tm + lane < n, nll, 0.0)

    # Fold TM lanes into a (1,128) per-block partial with vreg-aligned lane slices.
    part = nll[:, :128]
    for k in range(1, tm // 128):
        part = part + nll[:, k * 128:(k + 1) * 128]
    out_ref[0] = part                    # lane-dense (1,128) store into own slot


def amnre_loss_pallas(theta, x, b, w1, b1, w2, b2, *, tm=512,
                      feat_dtype=jnp.float32):
    """Wrapper: packs inputs into one feature-major stream and reduces block partials."""
    f32 = jnp.float32
    theta, x, b = theta.astype(f32), x.astype(f32), b.astype(f32)
    w1, b1, w2, b2 = w1.astype(f32), b1.astype(f32), w2.astype(f32), b2.astype(f32)

    n, d = theta.shape
    l = x.shape[-1]
    f = 2 * d + l
    h = w1.shape[-1]
    assert w1.shape[0] == f, "W1 rows must match [theta*b, b, x] feature width"

    # Global roll BEFORE any padding/tiling (halo-correct under the row-block grid).
    theta_p = jnp.roll(theta, 1, axis=0)

    # ONE packed, feature-major HBM stream: samples on lanes, features on sublanes.
    packed_t = jnp.concatenate([theta, theta_p, b, x], axis=-1).T.astype(feat_dtype)

    tm = _round_up(max(128, min(int(tm), _round_up(n, 128))), 128)
    n_pad = _round_up(n, tm)
    if n_pad != n:
        packed_t = jnp.pad(packed_t, ((0, 0), (0, n_pad - n)))
    num_blocks = n_pad // tm

    # Single W1 input (no per-call slices): transposed for the feature-major layout,
    # with b1 fused as an extra bias column.
    w1t_aug = jnp.concatenate([w1.T, b1.reshape(h, 1)], axis=1).astype(feat_dtype)
    w2_row = w2.reshape(1, h)            # stays f32 (tiny; second dot done in f32)
    b2_s = b2.reshape(1, 1)              # scalar -> SMEM

    kernel = functools.partial(_amnre_block_kernel, d=d, tm=tm, n=n)

    partials = pl.pallas_call(
        kernel,
        out_shape=jax.ShapeDtypeStruct((num_blocks, 1, 128), f32),
        grid=(num_blocks,),
        in_specs=[
            pl.BlockSpec((3 * d + l, tm), lambda i: (0, i)),    # packed features
            pl.BlockSpec((h, f + 1), lambda i: (0, 0)),         # W1^T | b1 (resident)
            pl.BlockSpec((1, h), lambda i: (0, 0)),             # W2^T      (resident)
            pl.BlockSpec(memory_space=pltpu.MemorySpace.SMEM),  # b2 scalar
        ],
        # Per-block lane-dense partials, reduced in the wrapper: no shared accumulator,
        # so the sample axis is safely "parallel" (uses both TCs on v7x, no race).
        out_specs=pl.BlockSpec((1, 1, 128), lambda i: (i, 0, 0)),
        compiler_params=pltpu.CompilerParams(
            dimension_semantics=("parallel",)),
    )(packed_t, w1t_aug, w2_row, b2_s)

    return jnp.sum(partials) / (2.0 * n)


def _reference_loss(theta, x, b, w1, b1, w2, b2):
    """Pure-JAX reference (mirrors the original torch semantics)."""
    theta_prime = jnp.roll(theta, 1, axis=0)
    feat_pos = jnp.concatenate([theta * b, b, x], axis=-1)
    feat_neg = jnp.concatenate([theta_prime * b, b, x], axis=-1)

    def mlp(feat):
        hh = jnp.maximum(feat @ w1 + b1, 0.0)
        return (hh @ w2 + b2)[:, 0]

    l1 = jnp.mean(-jax.nn.log_sigmoid(mlp(feat_pos)))
    l0 = jnp.mean(-jax.nn.log_sigmoid(-mlp(feat_neg)))
    return (l1 + l0) / 2


if __name__ == "__main__":
    def make_problem(key, n, d, l, hid):
        ks = jax.random.split(key, 7)
        theta = jax.random.normal(ks[0], (n, d), dtype=jnp.float32)
        x = jax.random.normal(ks[1], (n, l), dtype=jnp.float32)
        b = jax.random.bernoulli(ks[2], 0.5, (n, d)).astype(jnp.float32)
        f = 2 * d + l
        w1 = jax.random.normal(ks[3], (f, hid), dtype=jnp.float32) / jnp.sqrt(float(f))
        b1 = 0.1 * jax.random.normal(ks[4], (1, hid), dtype=jnp.float32)
        w2 = jax.random.normal(ks[5], (hid, 1), dtype=jnp.float32) / jnp.sqrt(float(hid))
        b2 = 0.1 * jax.random.normal(ks[6], (1, 1), dtype=jnp.float32)
        return theta, x, b, w1, b1, w2, b2

    key = jax.random.PRNGKey(0)
    k_small, k_big = jax.random.split(key)

    # Small shapes consistent with the module forward: theta (N, D), x (N, L).
    args_small = make_problem(k_small, 8, 4, 8, 32)
    loss = jax.block_until_ready(amnre_loss_pallas(*args_small))
    ref = _reference_loss(*args_small)
    assert jnp.allclose(loss, ref, rtol=1e-4, atol=1e-5), (loss, ref)

    # Multi-block grid + ragged tail (exercises the padding mask and parallel blocks).
    args_big = make_problem(k_big, 600, 4, 8, 32)
    loss_big = jax.block_until_ready(amnre_loss_pallas(*args_big, tm=256))
    ref_big = _reference_loss(*args_big)
    assert jnp.allclose(loss_big, ref_big, rtol=1e-4, atol=1e-5), (loss_big, ref_big)

    # bf16 streaming path (bf16 HBM/MXU inputs, f32 accumulation + elementwise).
    theta, x, b, w1, b1, w2, b2 = args_big
    q = lambda a: a.astype(jnp.bfloat16).astype(jnp.float32)
    loss_bf16 = jax.block_until_ready(
        amnre_loss_pallas(theta, x, b, w1, b1, w2, b2, tm=256,
                          feat_dtype=jnp.bfloat16))
    ref_bf16 = _reference_loss(q(theta), q(x), b, q(w1), q(b1), w2, b2)
    assert jnp.allclose(loss_bf16, ref_bf16, rtol=1e-2, atol=1e-2), (loss_bf16, ref_bf16)

    print("KERNEL_OK")
</pallas_src>

<mosaic_0001>
module attributes {stable_mosaic.version = 11 : i64} {
  func.func @_amnre_block_kernel(%arg0: i32, %arg1: memref<20x128xf32, #tpu.memory_space<vmem>>, %arg2: memref<32x17xf32, #tpu.memory_space<vmem>>, %arg3: memref<1x32xf32, #tpu.memory_space<vmem>>, %arg4: memref<1x1xf32, #tpu.memory_space<smem>>, %arg5: memref<1x1x128xf32, #tpu.memory_space<vmem>>) attributes {dimension_semantics = [#tpu.dimension_semantics<parallel>], iteration_bounds = array<i64: 1>, scalar_prefetch = 0 : i64, scratch_operands = 0 : i64, tpu.core_type = #tpu.core_type<tc>, window_params = [{transform_indices = @transform_0, window_bounds = array<i64: 20, 128>}, {pipeline_mode = #tpu.pipeline_mode<synchronous>, transform_indices = @transform_1, window_bounds = array<i64: 32, 17>}, {pipeline_mode = #tpu.pipeline_mode<synchronous>, transform_indices = @transform_2, window_bounds = array<i64: 1, 32>}, {transform_indices = @transform_3, window_bounds = array<i64: 1, 1>}, {transform_indices = @transform_4, window_bounds = array<i64: 1, 1, 128>}]} {
    %c0 = arith.constant 0 : index
    %c0_0 = arith.constant 0 : index
    %0 = vector.load %arg1[%c0, %c0_0] : memref<20x128xf32, #tpu.memory_space<vmem>>, vector<20x128xf32>
    %1 = vector.extract_strided_slice %0 {offsets = [0, 0], sizes = [4, 128], strides = [1, 1]} : vector<20x128xf32> to vector<4x128xf32>
    %2 = vector.extract_strided_slice %0 {offsets = [4, 0], sizes = [4, 128], strides = [1, 1]} : vector<20x128xf32> to vector<4x128xf32>
    %3 = vector.extract_strided_slice %0 {offsets = [8, 0], sizes = [4, 128], strides = [1, 1]} : vector<20x128xf32> to vector<4x128xf32>
    %4 = vector.extract_strided_slice %0 {offsets = [8, 0], sizes = [12, 128], strides = [1, 1]} : vector<20x128xf32> to vector<12x128xf32>
    %5 = arith.mulf %1, %3 : vector<4x128xf32>
    %6 = arith.mulf %2, %3 : vector<4x128xf32>
    %cst = arith.constant 1.000000e+00 : f32
    %7 = vector.broadcast %cst : f32 to vector<1x128xf32>
    %c0_1 = arith.constant 0 : index
    %c0_2 = arith.constant 0 : index
    %8 = vector.load %arg2[%c0_1, %c0_2] : memref<32x17xf32, #tpu.memory_space<vmem>>, vector<32x17xf32>
    %c0_3 = arith.constant 0 : index
    %c0_4 = arith.constant 0 : index
    %9 = vector.load %arg3[%c0_3, %c0_4] : memref<1x32xf32, #tpu.memory_space<vmem>>, vector<1x32xf32>
    %c0_5 = arith.constant 0 : index
    %c0_6 = arith.constant 0 : index
    %10 = memref.load %arg4[%c0_5, %c0_6] : memref<1x1xf32, #tpu.memory_space<smem>>
    %11 = tpu.concatenate %5, %4, %7 in 0 : vector<4x128xf32>, vector<12x128xf32>, vector<1x128xf32> -> vector<17x128xf32>
    %cst_7 = arith.constant dense<0.000000e+00> : vector<32x128xf32>
    %12 = tpu.matmul %8, %11, %cst_7 {dimension_numbers = #tpu.dot_dimension_numbers<[1], [0], [0], [1], [0, 0, 1, 1], [], []>} : vector<32x17xf32>, vector<17x128xf32>, vector<32x128xf32> -> vector<32x128xf32>
    %cst_8 = arith.constant 0.000000e+00 : f32
    %13 = vector.broadcast %cst_8 : f32 to vector<32x128xf32>
    %14 = arith.maximumf %12, %13 : vector<32x128xf32>
    %cst_9 = arith.constant dense<0.000000e+00> : vector<1x128xf32>
    %15 = tpu.matmul %9, %14, %cst_9 {dimension_numbers = #tpu.dot_dimension_numbers<[1], [0], [0], [1], [0, 0, 1, 1], [], []>} : vector<1x32xf32>, vector<32x128xf32>, vector<1x128xf32> -> vector<1x128xf32>
    %16 = vector.broadcast %10 : f32 to vector<1x128xf32>
    %17 = arith.addf %15, %16 : vector<1x128xf32>
    %cst_10 = arith.constant 1.000000e+00 : f32
    %18 = vector.broadcast %cst_10 : f32 to vector<1x128xf32>
    %19 = arith.mulf %18, %17 : vector<1x128xf32>
    %20 = math.absf %19 : vector<1x128xf32>
    %cst_11 = arith.constant 0.000000e+00 : f32
    %21 = vector.broadcast %cst_11 : f32 to vector<1x128xf32>
    %22 = arith.subf %21, %20 : vector<1x128xf32>
    %23 = math.exp %22 : vector<1x128xf32>
    %24 = math.log1p %23 : vector<1x128xf32>
    %cst_12 = arith.constant 0.000000e+00 : f32
    %25 = vector.broadcast %cst_12 : f32 to vector<1x128xf32>
    %26 = arith.minimumf %19, %25 : vector<1x128xf32>
    %27 = arith.subf %24, %26 : vector<1x128xf32>
    %28 = tpu.concatenate %6, %4, %7 in 0 : vector<4x128xf32>, vector<12x128xf32>, vector<1x128xf32> -> vector<17x128xf32>
    %cst_13 = arith.constant dense<0.000000e+00> : vector<32x128xf32>
    %29 = tpu.matmul %8, %28, %cst_13 {dimension_numbers = #tpu.dot_dimension_numbers<[1], [0], [0], [1], [0, 0, 1, 1], [], []>} : vector<32x17xf32>, vector<17x128xf32>, vector<32x128xf32> -> vector<32x128xf32>
    %cst_14 = arith.constant 0.000000e+00 : f32
    %30 = vector.broadcast %cst_14 : f32 to vector<32x128xf32>
    %31 = arith.maximumf %29, %30 : vector<32x128xf32>
    %cst_15 = arith.constant dense<0.000000e+00> : vector<1x128xf32>
    %32 = tpu.matmul %9, %31, %cst_15 {dimension_numbers = #tpu.dot_dimension_numbers<[1], [0], [0], [1], [0, 0, 1, 1], [], []>} : vector<1x32xf32>, vector<32x128xf32>, vector<1x128xf32> -> vector<1x128xf32>
    %33 = vector.broadcast %10 : f32 to vector<1x128xf32>
    %34 = arith.addf %32, %33 : vector<1x128xf32>
    %cst_16 = arith.constant -1.000000e+00 : f32
    %35 = vector.broadcast %cst_16 : f32 to vector<1x128xf32>
    %36 = arith.mulf %35, %34 : vector<1x128xf32>
    %37 = math.absf %36 : vector<1x128xf32>
    %cst_17 = arith.constant 0.000000e+00 : f32
    %38 = vector.broadcast %cst_17 : f32 to vector<1x128xf32>
    %39 = arith.subf %38, %37 : vector<1x128xf32>
    %40 = math.exp %39 : vector<1x128xf32>
    %41 = math.log1p %40 : vector<1x128xf32>
    %cst_18 = arith.constant 0.000000e+00 : f32
    %42 = vector.broadcast %cst_18 : f32 to vector<1x128xf32>
    %43 = arith.minimumf %36, %42 : vector<1x128xf32>
    %44 = arith.subf %41, %43 : vector<1x128xf32>
    %45 = arith.addf %27, %44 : vector<1x128xf32>
    %46 = tpu.iota {dimensions = array<i32: 1>} : vector<1x128xi32>
    %c128_i32 = arith.constant 128 : i32
    %47 = arith.muli %arg0, %c128_i32 : i32
    %48 = vector.broadcast %47 : i32 to vector<1x128xi32>
    %49 = arith.addi %48, %46 : vector<1x128xi32>
    %c8_i32 = arith.constant 8 : i32
    %50 = vector.broadcast %c8_i32 : i32 to vector<1x128xi32>
    %51 = arith.cmpi slt, %49, %50 : vector<1x128xi32>
    %cst_19 = arith.constant 0.000000e+00 : f32
    %52 = vector.broadcast %cst_19 : f32 to vector<1x128xf32>
    %53 = arith.select %51, %45, %52 : vector<1x128xi1>, vector<1x128xf32>
    %c0_20 = arith.constant 0 : index
    %c0_21 = arith.constant 0 : index
    %c0_22 = arith.constant 0 : index
    %54 = vector.load %arg5[%c0_20, %c0_21, %c0_22] : memref<1x1x128xf32, #tpu.memory_space<vmem>>, vector<1x1x128xf32>
    %55 = vector.shape_cast %54 : vector<1x1x128xf32> to vector<1x128xf32>
    %56 = vector.shape_cast %53 : vector<1x128xf32> to vector<1x1x128xf32>
    tpu.vector_store %arg5[%c0_20, %c0_21, %c0_22], %56 {strides = array<i32>} : memref<1x1x128xf32, #tpu.memory_space<vmem>>, vector<1x1x128xf32>,
    return
  }
  func.func @transform_0(%arg0: i32) -> (i32, i32) {
    %c0_i32 = arith.constant 0 : i32
    %c0_i32_0 = arith.constant 0 : i32
    return %c0_i32, %arg0 : i32, i32
  }
  func.func @transform_1(%arg0: i32) -> (i32, i32) {
    %c0_i32 = arith.constant 0 : i32
    %c0_i32_0 = arith.constant 0 : i32
    %c0_i32_1 = arith.constant 0 : i32
    return %c0_i32, %c0_i32_0 : i32, i32
  }
  func.func @transform_2(%arg0: i32) -> (i32, i32) {
    %c0_i32 = arith.constant 0 : i32
    %c0_i32_0 = arith.constant 0 : i32
    %c0_i32_1 = arith.constant 0 : i32
    return %c0_i32, %c0_i32_0 : i32, i32
  }
  func.func @transform_3(%arg0: i32) -> (i32, i32) {
    %c0_i32 = arith.constant 0 : i32
    %c0_i32_0 = arith.constant 0 : i32
    %c0_i32_1 = arith.constant 0 : i32
    return %c0_i32, %c0_i32_0 : i32, i32
  }
  func.func @transform_4(%arg0: i32) -> (i32, i32, i32) {
    %c0_i32 = arith.constant 0 : i32
    %c0_i32_0 = arith.constant 0 : i32
    %c0_i32_1 = arith.constant 0 : i32
    return %arg0, %c0_i32, %c0_i32_0 : i32, i32, i32
  }
}

</mosaic_0001>

<bundles_post_ra>
// kernel: tpu_custom_call.1
= control target key start
LH: loop header
LB: loop body
LE: loop exit
PB: predicated region body
PF: predicated region fallthrough
CT: control target
= control target key end

     0   :  { %vm52_vm0 = vcmask 1040384   ;;  %vm34_vm1 = vcmask 1043456   ;;  %v553_v2 = vmov 1.0   ;;  %vm39_vm2 = vcmask 138240   ;;  %s631_s0 = inlined_call_operand.vmem [shape: f32[20,128], index: 0, kind: input, shape index: {}]   ;;  %s632_s1 = inlined_call_operand.vmem [shape: f32[32,17], index: 1, kind: input, shape index: {}]   ;;  %s633_s2 = inlined_call_operand.vmem [shape: f32[1,32], index: 2, kind: input, shape index: {}]   ;;  %s634_s3 = inlined_call_operand.<no memory space> [shape: f32[1,1], index: 3, kind: input, shape index: {}]   ;;  %s635_s4 = inlined_call_operand.hbm [shape: f32[1,1,128], index: 4, kind: output, shape index: {}]  }
   0x1   :  { %v20_v0 = vld [vmem:[%s631_s0 + $0x8] sm:$0xff]  ;;  %v21_v1 = vld [vmem:[%s631_s0 + $0x10] sm:$0xf]  ;;  %473 = vmatprep.subr.msk.mxu0 %vm52_vm0, %v553_v2  ;;  %v19_v5 = vld [vmem:[%s631_s0] sm:$0xff] }
   0x2   :  { %v24_v3 = vrot.slane %v20_v0, 4  ;;  %v35_v4 = vrot.slane %v21_v1, 4  ;;  %v27_v6 = vld [vmem:[%s632_s1] sm:$0xff]  ;;  %474 = vmatpush3.msk.msra.mxu0 %vm52_vm0, %v553_v2  ;;  %v22_v7 = vmul.f32 %v20_v0, %v19_v5 }
   0x3   :  { %479 = vmatprep.mubr.msk.f32.mxu0 %vm39_vm2, %v27_v6 }
   0x4   :  { %10 = vsyncpa [#allocation4], 0  ;;  %v36_v8 = vsel %vm34_vm1, %v24_v3, %v35_v4  ;;  %v26_v9 = vmul.f32 %v24_v3, %v19_v5  ;;  %v38_v10 = vsel %vm34_vm1, %v22_v7, %v24_v3  ;;  %v28_v11 = vld [vmem:[%s632_s1 + $0x8] sm:$0xff]  ;;  %v29_v13 = vld [vmem:[%s632_s1 + $0x10] sm:$0xff]  ;;  %v554_v16 = vmov 0.0  }
   0x5   :  { %475 = vmatprep.subr.mxu0 %v36_v8  ;;  %v30_v14 = vld [vmem:[%s632_s1 + $0x18] sm:$0xff]  ;;  %485 = vmatprep.subr.mxu1 %v554_v16  ;;  %vm555_vm3 = vmmov 0   ;;  %v31_v27 = vld [vmem:[%s633_s2] sm:$0x1]  ;;  %vm146_vm4 = vcmask 261120   ;;  %v145_v34 = vstv %s634_s3  ;;  %v415_v59 = vlaneseq  ;;  %s556_s3 = smov [#allocation3]  }
   0x6   :  { %476 = vmatpush3.msra.mxu0 %v36_v8  ;;  %v236_v12 = vrot.slane %v26_v9, 4  ;;  %493 = vmatprep.mubr.msk.f32.mxu1 %vm555_vm3, %v554_v16  ;;  %s429_s30 = sshll.u32 %s556_s3, 4  ;;  %s430_s30 = int_to_ptr.vmem [resolvable:$true] %s429_s30 }
   0x7   :  { %477 = vmatprep.subr.mxu0 %v38_v10  ;;  %s531_s5 = scalar_lea.vmem %s430_s30, 16  ;;  %s535_s6 = scalar_lea.vmem %s430_s30, 32 }
   0x8   :  { %478 = vmatpush3.msra.mxu0 %v38_v10  ;;  %v238_v15 = vsel %vm34_vm1, %v236_v12, %v24_v3  ;;  %p532_p0 = scmp.ne.s32.totalorder %s430_s30, %s531_s5  ;;  %p536_p1 = scmp.lt.s32.totalorder %s430_s30, %s430_s30 }
   0x9   :  { %480 = vmatmul.mubr.msk.f32.vlgmr.msra.gmra.mxu0 %vm39_vm2, %v28_v11  ;;  %496 = vmatprep.subr.msk.mxu0 %vm52_vm0, %v553_v2  ;;  %p537_p2 = scmp.lt.s32.totalorder %s535_s6, %s531_s5 }
   0xa   :  { %497 = vmatpush3.msk.msra.mxu0 %vm52_vm0, %v553_v2  ;;  %482 = vmatprep.mubr.msk.f32.mxu0 %vm39_vm2, %v29_v13  ;;  %v416_v2 = vand.u32 127, %v415_v59 }
   0xb   :  { %498 = vmatprep.subr.mxu0 %v36_v8  ;;  %p538_p3 = por %p537_p2, %p536_p1 }
   0xc   :  { %499 = vmatpush3.msra.mxu0 %v36_v8  ;;  %vm420_vm7 = vcmp.lt.s32.totalorder %v416_v2, 8 }
   0xd   :  { %483 = vmatmul.mubr.msk.f32.gmra.mxu0 %vm39_vm2, %v30_v14  ;;  %500 = vmatprep.subr.mxu0 %v238_v15  ;;  %p539_p4 = pnand %p538_p3, %p532_p0 }
   0xe   :  { %501 = vmatpush3.msra.mxu0 %v238_v15  ;;  %502 = vmatprep.mubr.msk.f32.mxu0 %vm39_vm2, %v27_v6 }
  0x11   :  { %503 = vmatmul.mubr.msk.f32.vlgmr.msra.gmra.mxu0 %vm39_vm2, %v28_v11 }
  0x12   :  { %505 = vmatprep.mubr.msk.f32.mxu0 %vm39_vm2, %v29_v13 }
  0x15   :  { %506 = vmatmul.mubr.msk.f32.gmra.mxu0 %vm39_vm2, %v30_v14 }
  0xc9   :  { %v481_v17 = vpop.f32.mrf.mxu0 }
  0xca   :  { %v142_v24 = vmax.f32 %v481_v17, 0.0 }
  0xcb   :  { %v122_v18 = vpop.f32.mrf.mxu0 }
  0xcc   :  { %v141_v26 = vmax.f32 %v122_v18, 0.0 }
  0xcd   :  { %v484_v19 = vpop.f32.mrf.mxu0 }
  0xce   :  { %v144_v20 = vmax.f32 %v484_v19, 0.0 }
  0xcf   :  { %v132_v21 = vpop.f32.mrf.mxu0 }
  0xd0   :  { %v143_v22 = vmax.f32 %v132_v21, 0.0  ;;  %486 = vmatpush3.msra.mxu1 %v144_v20 }
  0xd1   :  { %487 = vmatprep.subr.mxu1 %v554_v16  ;;  %v504_v23 = vpop.f32.mrf.mxu0 }
  0xd2   :  { %488 = vmatpush3.msra.mxu1 %v143_v22  ;;  %v325_v32 = vmax.f32 %v504_v23, 0.0 }
  0xd3   :  { %489 = vmatprep.subr.mxu1 %v554_v16  ;;  %v305_v25 = vpop.f32.mrf.mxu0 }
  0xd4   :  { %490 = vmatpush3.msra.mxu1 %v142_v24  ;;  %v324_v33 = vmax.f32 %v305_v25, 0.0 }
  0xd5   :  { %491 = vmatprep.subr.mxu1 %v554_v16  ;;  %v507_v28 = vpop.f32.mrf.mxu0 }
  0xd6   :  { %v327_v29 = vmax.f32 %v507_v28, 0.0  ;;  %492 = vmatpush3.msra.mxu1 %v141_v26 }
  0xd7   :  { %494 = vmatmul.mubr.msk.f32.vlgmr.msra.gmra.mxu1 %vm146_vm4, %v31_v27  ;;  %v315_v30 = vpop.f32.mrf.mxu0  ;;  %508 = vmatprep.subr.mxu1 %v554_v16 }
  0xd8   :  { %v326_v31 = vmax.f32 %v315_v30, 0.0  ;;  %509 = vmatpush3.msra.mxu1 %v327_v29  ;;  %516 = vmatprep.mubr.msk.f32.mxu1 %vm555_vm3, %v554_v16 }
  0xd9   :  { %510 = vmatprep.subr.mxu1 %v554_v16 }
  0xda   :  { %511 = vmatpush3.msra.mxu1 %v326_v31 }
  0xdb   :  { %512 = vmatprep.subr.mxu1 %v554_v16 }
  0xdc   :  { %513 = vmatpush3.msra.mxu1 %v325_v32 }
  0xdd   :  { %514 = vmatprep.subr.mxu1 %v554_v16 }
  0xde   :  { %515 = vmatpush3.msra.mxu1 %v324_v33 }
  0xdf   :  { %517 = vmatmul.mubr.msk.f32.vlgmr.msra.gmra.mxu1 %vm146_vm4, %v31_v27 }
 0x197   :  { %v216_v35 = vpop.f32.mrf.mxu1 }
 0x198   :  { %v217_v36 = vadd.f32 %v216_v35, %v145_v34 }
 0x199   :  { %v495_v37 = vpop.f32.mrf.mxu1 }
 0x19a   :  { %v220_v38 = vand.u32 2147483647, %v217_v36  ;;  %v233_v3 = vmin.f32 %v217_v36, 0.0 }
 0x19c   :  { %v221_v39 = vsub.f32 0.0, %v220_v38 }
 0x19e   :  { %v222_v40 = vmul.f32 1.442695, %v221_v39 }
 0x19f   :  { %v394_v41 = vpop.f32.mrf.mxu1 }
 0x1a0   :  { %523 = vpow2.f32 %v222_v40  ;;  %v395_v42 = vadd.f32 %v394_v41, %v145_v34 }
 0x1a1   :  { %v518_v43 = vpop.f32.mrf.mxu1 }
 0x1a2   :  { %v398_v44 = vmul.f32 -1.0, %v395_v42 }
 0x1a4   :  { %v399_v45 = vand.u32 2147483647, %v398_v44  ;;  %v412_v4 = vmin.f32 %v398_v44, 0.0 }
 0x1a6   :  { %v400_v46 = vsub.f32 0.0, %v399_v45 }
 0x1a8   :  { %v401_v47 = vmul.f32 1.442695, %v400_v46 }
 0x1aa   :  { %525 = vpow2.f32 %v401_v47 }
 0x1ad   :  { %v524_v48 = vpop.eup %523 }
 0x1ae   :  { %v224_v49 = vadd.f32 1.0, %v524_v48  ;;  %v227_v52 = vmul.f32 -0.5, %v524_v48  ;;  %v230_v56 = vand.u32 2147483647, %v524_v48 }
 0x1b0   :  { %527 = vlog2.f32 %v224_v49  ;;  %v228_v55 = vadd.f32 1.0, %v227_v52  ;;  %vm231_vm5 = vcmp.lt.f32.partialorder %v230_v56, 0.0004427343 }
 0x1b2   :  { %v229_v61 = vmul.f32 %v524_v48, %v228_v55 }
 0x1b7   :  { %v526_v50 = vpop.eup %525 }
 0x1b8   :  { %v403_v51 = vadd.f32 1.0, %v526_v50  ;;  %v406_v53 = vmul.f32 -0.5, %v526_v50  ;;  %v409_v60 = vand.u32 2147483647, %v526_v50 }
 0x1ba   :  { %529 = vlog2.f32 %v403_v51  ;;  %v407_v58 = vadd.f32 1.0, %v406_v53  ;;  %vm410_vm6 = vcmp.lt.f32.partialorder %v409_v60, 0.0004427343 }
 0x1bc   :  { %v408_v1 = vmul.f32 %v526_v50, %v407_v58 }
 0x1bd   :  { %v528_v54 = vpop.eup %527 }
 0x1be   :  { %v226_v57 = vmul.f32 0.6931472, %v528_v54 }
 0x1c0   :  { %v232_v63 = vsel %vm231_vm5, %v229_v61, %v226_v57 }
 0x1c1   :  { %v234_v6 = vsub.f32 %v232_v63, %v233_v3 }
 0x1c7   :  { %v530_v62 = vpop.eup %529 }
 0x1c8   :  { %v405_v0 = vmul.f32 0.6931472, %v530_v62 }
 0x1ca   :  { %v411_v5 = vsel %vm410_vm6, %v408_v1, %v405_v0 }
 0x1cb   :  { %v413_v7 = vsub.f32 %v411_v5, %v412_v4 }
 0x1cd   :  { %v414_v8 = vadd.f32 %v413_v7, %v234_v6 }
 0x1cf   :  { %v421_v9 = vsel %vm420_vm7, %v414_v8, 0.0 }
 0x1d0   :  { %422 = vst [vmem:[#allocation3] sm:$0x1] %v421_v9 }
 0x1d1   :  { %542 = shalt.err (!%p539_p4)
}
 0x1d2   :  { %432 = dma.vmem_to_hbm [thread:$0]  %s430_s30, 16, %s635_s4, [#allocation4]  }
 0x1d3   :  { %551 = dma.done.wait [#allocation4], 16  }
 0x1d4   :  { %552 = vsyncadd [#allocation4], 4294967280 }
 0x1d5   :  { %436 = vsyncpa [#allocation4], 1 }

</bundles_post_ra>
